<compile_context>
chip_gen: v7x
topology: tpu7x:2x2x1
jax: 0.10.0
libtpu: 0.0.40
codegen_flags: <defaults>
</compile_context>

<pallas_src>
import jax
import jax.numpy as jnp
from jax import lax
from jax.experimental import pallas as pl
from jax.experimental.pallas import tpu as pltpu

BATCH = 20
DIM = 10

# Contract the last dim of x/h with the last dim of W (PyTorch (out, in) layout):
# y[n, o] = sum_i x[n, i] * W[o, i]  ==  x @ W.T
_DOT_XT = (((1,), (1,)), ((), ()))


def toy_model_kernel(x_ref, w1_ref, w2_ref, o_ref):
    x = x_ref[...]                                           # (BATCH, DIM) f32
    # lin1 + relu (MXU matmul, f32 accumulate)
    h = jnp.maximum(
        lax.dot_general(x, w1_ref[...], _DOT_XT,
                        preferred_element_type=jnp.float32),
        0.0,
    )
    # lin2 computed unconditionally; selected below (single extra MXU push).
    out2 = lax.dot_general(h, w2_ref[...], _DOT_XT,
                           preferred_element_type=jnp.float32)
    # torch.equal(x, ones(batch, dim)) -> scalar reduction inside the kernel.
    use_second = jnp.all(x == jnp.float32(1.0))
    o_ref[...] = jnp.where(use_second, out2, h).astype(o_ref.dtype)


def toy_model_forward(x, w1, w2):
    """x: (BATCH, DIM) f32; w1, w2: (out, in) = (10, 10) f32 (PyTorch layout)."""
    return pl.pallas_call(
        toy_model_kernel,
        out_shape=jax.ShapeDtypeStruct((BATCH, DIM), jnp.float32),
        in_specs=[
            pl.BlockSpec(memory_space=pltpu.MemorySpace.VMEM),
            pl.BlockSpec(memory_space=pltpu.MemorySpace.VMEM),
            pl.BlockSpec(memory_space=pltpu.MemorySpace.VMEM),
        ],
        out_specs=pl.BlockSpec(memory_space=pltpu.MemorySpace.VMEM),
    )(x, w1, w2)


def toy_model_reference(x, w1, w2):
    h = jnp.maximum(x @ w1.T, 0.0)
    out2 = h @ w2.T
    return jnp.where(jnp.all(x == 1.0), out2, h)


if __name__ == "__main__":
    key = jax.random.PRNGKey(0)
    kx, k1, k2 = jax.random.split(key, 3)

    # Deterministic parameter init (mimics nn.Linear uniform(-1/sqrt(fan_in), ..)).
    bound = 1.0 / jnp.sqrt(jnp.float32(DIM))
    w1 = jax.random.uniform(k1, (DIM, DIM), jnp.float32, -bound, bound)
    w2 = jax.random.uniform(k2, (DIM, DIM), jnp.float32, -bound, bound)

    # Case 1: generic input -> relu(lin1(x)) branch.
    x_rand = jax.random.normal(kx, (BATCH, DIM), jnp.float32)
    out_rand = jax.block_until_ready(toy_model_forward(x_rand, w1, w2))

    # Case 2: all-ones input -> lin2(relu(lin1(x))) branch.
    x_ones = jnp.ones((BATCH, DIM), jnp.float32)
    out_ones = jax.block_until_ready(toy_model_forward(x_ones, w1, w2))

    ref_rand = toy_model_reference(x_rand, w1, w2)
    ref_ones = toy_model_reference(x_ones, w1, w2)

    assert jnp.allclose(out_rand, ref_rand, atol=1e-5, rtol=1e-5)
    assert jnp.allclose(out_ones, ref_ones, atol=1e-5, rtol=1e-5)

    print("KERNEL_OK")
</pallas_src>

<mosaic_0001>
module attributes {stable_mosaic.version = 11 : i64} {
  func.func @toy_model_kernel(%arg0: memref<20x10xf32, #tpu.memory_space<vmem>>, %arg1: memref<10x10xf32, #tpu.memory_space<vmem>>, %arg2: memref<10x10xf32, #tpu.memory_space<vmem>>, %arg3: memref<20x10xf32, #tpu.memory_space<vmem>>) attributes {dimension_semantics = [], scalar_prefetch = 0 : i64, scratch_operands = 0 : i64, tpu.core_type = #tpu.core_type<tc>} {
    %c0 = arith.constant 0 : index
    %c0_0 = arith.constant 0 : index
    %0 = vector.load %arg0[%c0, %c0_0] : memref<20x10xf32, #tpu.memory_space<vmem>>, vector<20x10xf32>
    %c0_1 = arith.constant 0 : index
    %c0_2 = arith.constant 0 : index
    %1 = vector.load %arg1[%c0_1, %c0_2] : memref<10x10xf32, #tpu.memory_space<vmem>>, vector<10x10xf32>
    %cst = arith.constant dense<0.000000e+00> : vector<20x10xf32>
    %2 = tpu.matmul %0, %1, %cst {dimension_numbers = #tpu.dot_dimension_numbers<[1], [1], [0], [0], [0, 0, 1, 0], [], []>} : vector<20x10xf32>, vector<10x10xf32>, vector<20x10xf32> -> vector<20x10xf32>
    %cst_3 = arith.constant 0.000000e+00 : f32
    %3 = vector.broadcast %cst_3 : f32 to vector<20x10xf32>
    %4 = arith.maximumf %2, %3 : vector<20x10xf32>
    %c0_4 = arith.constant 0 : index
    %c0_5 = arith.constant 0 : index
    %5 = vector.load %arg2[%c0_4, %c0_5] : memref<10x10xf32, #tpu.memory_space<vmem>>, vector<10x10xf32>
    %cst_6 = arith.constant dense<0.000000e+00> : vector<20x10xf32>
    %6 = tpu.matmul %4, %5, %cst_6 {dimension_numbers = #tpu.dot_dimension_numbers<[1], [1], [0], [0], [0, 0, 1, 0], [], []>} : vector<20x10xf32>, vector<10x10xf32>, vector<20x10xf32> -> vector<20x10xf32>
    %cst_7 = arith.constant 1.000000e+00 : f32
    %7 = vector.broadcast %cst_7 : f32 to vector<20x10xf32>
    %8 = arith.cmpf oeq, %0, %7 : vector<20x10xf32>
    %cst_8 = arith.constant 1.000000e+00 : f32
    %cst_9 = arith.constant 0.000000e+00 : f32
    %9 = vector.broadcast %cst_8 : f32 to vector<20x10xf32>
    %10 = vector.broadcast %cst_9 : f32 to vector<20x10xf32>
    %11 = arith.select %8, %9, %10 : vector<20x10xi1>, vector<20x10xf32>
    %12 = vector.shape_cast %11 : vector<20x10xf32> to vector<1x20x10xf32>
    %cst_10 = arith.constant dense<0x7F800000> : vector<1xf32>
    %13 = vector.multi_reduction <minimumf>, %12, %cst_10 [1, 2] : vector<1x20x10xf32> to vector<1xf32>
    %14 = vector.shape_cast %13 : vector<1xf32> to vector<1x1x1xf32>
    %15 = vector.extract %14[0, 0, 0] : f32 from vector<1x1x1xf32>
    %cst_11 = arith.constant 0.000000e+00 : f32
    %16 = arith.cmpf ogt, %15, %cst_11 : f32
    %17 = arith.select %16, %6, %4 : vector<20x10xf32>
    %c0_12 = arith.constant 0 : index
    %c0_13 = arith.constant 0 : index
    %18 = vector.load %arg3[%c0_12, %c0_13] : memref<20x10xf32, #tpu.memory_space<vmem>>, vector<20x10xf32>
    tpu.vector_store %arg3[%c0_12, %c0_13], %17 {strides = array<i32>} : memref<20x10xf32, #tpu.memory_space<vmem>>, vector<20x10xf32>,
    return
  }
}

</mosaic_0001>

<bundles_post_ra>
// kernel: tpu_custom_call.1
= control target key start
LH: loop header
LB: loop body
LE: loop exit
PB: predicated region body
PF: predicated region fallthrough
CT: control target
= control target key end

     0   :  { %vm19_vm0 = vcmask 80896   ;;  %v309_v0 = vmov 0.0|0.0   ;;  %vm310_vm2 = vmmov 0   ;;  %v311_v3 = vmov 0.0   ;;  %s382_s1 = inlined_call_operand.vmem [shape: f32[10,10], index: 1, kind: input, shape index: {}]   ;;  %s383_s2 = inlined_call_operand.vmem [shape: f32[10,10], index: 2, kind: input, shape index: {}]   ;;  %s384_s0 = inlined_call_operand.vmem [shape: f32[20,10], index: 0, kind: input, shape index: {}]   ;;  %s385_s3 = inlined_call_operand.vmem [shape: f32[20,10], index: 3, kind: output, shape index: {}]  }
   0x1   :  { %296 = vmatprep.subr.bf16.mxu0 %v309_v0  ;;  %v17_v1 = vld [vmem:[%s382_s1] sm:$0xff]  ;;  %v18_v2 = vld [vmem:[%s382_s1 + $0x8] sm:$0x3]  ;;  %vm298_vm1 = vmpackc.low %vm19_vm0, %vm19_vm0  ;;  %274 = vmatprep.mubr.msk.f32.mxu0 %vm310_vm2, %v311_v3  ;;  %vm223_vm6 = vcmask 76800  }
   0x2   :  { %v297_v4 = vpack.c.bf16 %v18_v2, %v17_v1  ;;  %300 = vmatprep.subr.bf16.mxu1 %v309_v0  ;;  %287 = vmatprep.mubr.msk.f32.mxu1 %vm310_vm2, %v311_v3  ;;  %v118_v5 = vld [vmem:[%s383_s2] sm:$0xff]  ;;  %v119_v6 = vld [vmem:[%s383_s2 + $0x8] sm:$0x3]  ;;  %v16_v10 = vld [vmem:[%s384_s0 + $0x10] sm:$0xf] }
   0x3   :  { %v301_v7 = vpack.c.bf16 %v119_v6, %v118_v5  ;;  %v14_v8 = vld [vmem:[%s384_s0] sm:$0xff]  ;;  %v15_v9 = vld [vmem:[%s384_s0 + $0x8] sm:$0xff]  ;;  %vm217_vm5 = vcmp.eq.f32.partialorder %v16_v10, 1.0 }
   0x4   :  { %299 = vmatpush3.bf16.xpose.msk.msra.mxu0 %vm298_vm1, %v297_v4  ;;  %vm215_vm3 = vcmp.eq.f32.partialorder %v14_v8, 1.0  ;;  %vm216_vm4 = vcmp.eq.f32.partialorder %v15_v9, 1.0  ;;  %v220_v15 = vsel %vm217_vm5, 1.0, %v311_v3 }
   0x5   :  { %303 = vmatpush3.bf16.xpose.msk.msra.mxu1 %vm298_vm1, %v301_v7  ;;  %v218_v11 = vsel %vm215_vm3, 1.0, %v311_v3  ;;  %v219_v12 = vsel %vm216_vm4, 1.0, %v311_v3  ;;  %v224_v17 = vsel %vm223_vm6, %v220_v15, inf }
   0x6   :  { %v221_v13 = vsel %vm19_vm0, %v218_v11, inf  ;;  %v222_v14 = vsel %vm19_vm0, %v219_v12, inf }
   0x7   :  { %v225_v16 = vmin.f32 %v221_v13, %v222_v14 }
   0x9   :  { %v226_v18 = vmin.f32 %v225_v16, %v224_v17 }
   0xb   :  { %275 = vmatmul.mubr.msk.f32.vlgmr.msra.gmra.mrb[0].mxu0 %vm19_vm0, %v14_v8  ;;  %227 = vmin.xlane.f32.xlu0 %v226_v18 }
   0xc   :  { %277 = vmatprep.mubr.msk.f32.mxu0 %vm310_vm2, %v311_v3 }
   0xf   :  { %278 = vmatmul.mubr.msk.f32.gmra.mrb[2].mxu0 %vm19_vm0, %v15_v9 }
  0x10   :  { %280 = vmatprep.mubr.msk.f32.mxu0 %vm310_vm2, %v311_v3 }
  0x13   :  { %281 = vmatmul.mubr.msk.f32.gmra.mrb[4].mxu0 %vm19_vm0, %v16_v10 }
  0x98   :  { %v228_v28 = vpop.xlane.xlu0 %227 }
  0x99   :  { %v229_v29 = vrot.slane %v228_v28, 4 }
  0x9b   :  { %v230_v30 = vmin.f32 %v228_v28, %v229_v29 }
  0x9d   :  { %v231_v31 = vrot.slane %v230_v30, 2 }
  0x9f   :  { %v232_v32 = vmin.f32 %v230_v30, %v231_v31 }
  0xa1   :  { %v233_v33 = vrot.slane %v232_v32, 1 }
  0xa3   :  { %v234_v34 = vmin.f32 %v232_v32, %v233_v33 }
  0xa5   :  { %304 = vpush %v234_v34 }
  0xd6   :  { %s305_s0 = spop %304 }
  0xd7   :  { %p236_p0 = scmp.gt.f32.partialorder %s305_s0, 0.0 }
  0xd9   :  { %s237_s24 = scalar_select %p236_p0, 1, 0 }
  0xdb   :  { %v238_v35 = vstv %s237_s24 }
  0xdc   :  { %vm239_vm7 = vcmp.eq.s32.totalorder %v238_v35, 1 }
  0xde   :  { %v101_v19 = vpop.f32.mrb[0].mxu0 }
  0xdf   :  { %v115_v20 = vmax.f32 %v101_v19, 0.0  ;;  %v276_v21 = vpop.f32.mrb[1].mxu0 }
  0xe1   :  { %288 = vmatmul.mubr.msk.f32.vlgmr.msra.gmra.mrb[0].mxu1 %vm19_vm0, %v115_v20 }
  0xe2   :  { %v106_v22 = vpop.f32.mrb[2].mxu0  ;;  %290 = vmatprep.mubr.msk.f32.mxu1 %vm310_vm2, %v311_v3 }
  0xe3   :  { %v116_v23 = vmax.f32 %v106_v22, 0.0  ;;  %v279_v24 = vpop.f32.mrb[3].mxu0 }
  0xe5   :  { %291 = vmatmul.mubr.msk.f32.gmra.mrb[2].mxu1 %vm19_vm0, %v116_v23 }
  0xe6   :  { %v111_v25 = vpop.f32.mrb[4].mxu0  ;;  %293 = vmatprep.mubr.msk.f32.mxu1 %vm310_vm2, %v311_v3 }
  0xe7   :  { %v117_v26 = vmax.f32 %v111_v25, 0.0  ;;  %v282_v27 = vpop.f32.mrb[5].mxu0 }
  0xe9   :  { %294 = vmatmul.mubr.msk.f32.gmra.mrb[4].mxu1 %vm19_vm0, %v117_v26 }
 0x1b4   :  { %v201_v36 = vpop.f32.mrb[0].mxu1 }
 0x1b5   :  { %v240_v37 = vsel %vm239_vm7, %v201_v36, %v115_v20  ;;  %v289_v38 = vpop.f32.mrb[1].mxu1 }
 0x1b6   :  { %243 = vst.msk [vmem:[%s385_s3] sm:$0xff] %vm19_vm0, %v240_v37 }
 0x1b8   :  { %v206_v39 = vpop.f32.mrb[2].mxu1 }
 0x1b9   :  { %v241_v40 = vsel %vm239_vm7, %v206_v39, %v116_v23  ;;  %v292_v41 = vpop.f32.mrb[3].mxu1 }
 0x1ba   :  { %244 = vst.msk [vmem:[%s385_s3 + $0x8] sm:$0xff] %vm19_vm0, %v241_v40 }
 0x1bc   :  { %v211_v42 = vpop.f32.mrb[4].mxu1 }
 0x1bd   :  { %v242_v43 = vsel %vm239_vm7, %v211_v42, %v117_v26  ;;  %v295_v44 = vpop.f32.mrb[5].mxu1 }
 0x1be   :  { %245 = vst.msk [vmem:[%s385_s3 + $0x10] sm:$0xf] %vm223_vm6, %v242_v43 }

</bundles_post_ra>
